<compile_context>
chip_gen: v7x
topology: tpu7x:2x2x1
jax: 0.10.0
libtpu: 0.0.40
codegen_flags: <defaults>
</compile_context>

<pallas_src>
import math
import jax
import jax.numpy as jnp
from jax.experimental import pallas as pl
from jax.experimental.pallas import tpu as pltpu


def text_encoder_kernel(ids_ref, mask_ref, emb_ref, wqkv_ref, wp_ref, bp_ref, o_ref):
    """Whole batch in one program.

    ids_ref  : (B*S, 1) int32   token ids (flattened over batch*seq)
    mask_ref : (B, S)   int32   attention mask (1 = keep, 0 = pad)
    emb_ref  : (V, Dw)  bf16    token embedding table
    wqkv_ref : (Dw, 3Dw) bf16   fused Q/K/V projection
    wp_ref   : (Dw, De) bf16    pooler weight (right-multiply layout)
    bp_ref   : (1, De)  f32     pooler bias
    o_ref    : (B*S, De) f32    output
    """
    B, S = mask_ref.shape
    BS = B * S
    V, Dw = emb_ref.shape
    scale = 1.0 / math.sqrt(Dw)

    # --- embedding gather as a one-hot matmul (tiny vocab -> MXU-friendly) ---
    ids = ids_ref[...]                                            # (BS, 1) int32
    iota_v = jax.lax.broadcasted_iota(jnp.int32, (BS, V), 1)      # (BS, V)
    one_hot = (ids == iota_v).astype(emb_ref.dtype)               # (BS, V) bf16
    x = jnp.dot(one_hot, emb_ref[...],
                preferred_element_type=jnp.float32)               # (BS, Dw) f32

    # --- fused QKV projection (single matmul) ---
    qkv = jnp.dot(x.astype(wqkv_ref.dtype), wqkv_ref[...],
                  preferred_element_type=jnp.float32)             # (BS, 3Dw) f32
    q = qkv[:, :Dw].reshape(B, S, Dw)
    k = qkv[:, Dw:2 * Dw].reshape(B, S, Dw)
    v = qkv[:, 2 * Dw:].reshape(B, S, Dw)

    # --- masked scaled-dot-product attention (softmax kept in f32) ---
    maskf = mask_ref[...].astype(jnp.float32)                     # (B, S)
    bias = ((1.0 - maskf) * -1e9)[:, None, :]                     # (B, 1, S)
    s = jnp.einsum('bqd,bkd->bqk', q, k,
                   preferred_element_type=jnp.float32) * scale + bias
    m = jnp.max(s, axis=-1, keepdims=True)
    e = jnp.exp(s - m)
    p = e * pl.reciprocal(jnp.sum(e, axis=-1, keepdims=True), approx=True)
    ctx = jnp.einsum('bqk,bkd->bqd', p, v,
                     preferred_element_type=jnp.float32)          # (B, S, Dw)
    h = (ctx + x.reshape(B, S, Dw)).reshape(BS, Dw)               # residual

    # --- text_pooler: Linear(Dw -> De), no activation in the reference forward ---
    out = jnp.dot(h.astype(wp_ref.dtype), wp_ref[...],
                  preferred_element_type=jnp.float32) + bp_ref[...]
    o_ref[...] = out.astype(o_ref.dtype)


def text_embedding_forward(news, params, num_words_title):
    """news: int32 [B, >= 2*num_words_title]. Returns [B, S, embedding_dim]."""
    text_length = 2 * num_words_title
    text = news[:, :text_length]                      # torch.narrow(news, 1, 0, text_length)
    text_ids = text[:, :num_words_title]              # [B, S]
    text_attmask = text[:, num_words_title:]          # [B, S]

    B, S = text_ids.shape
    emb = params["token_emb"]                         # [V, Dw] bf16
    De = params["wp_t"].shape[1]

    ids_flat = text_ids.reshape(B * S, 1).astype(jnp.int32)
    attmask = text_attmask.astype(jnp.int32)

    vmem = pl.BlockSpec(memory_space=pltpu.MemorySpace.VMEM)
    out_flat = pl.pallas_call(
        text_encoder_kernel,
        out_shape=jax.ShapeDtypeStruct((B * S, De), jnp.float32),
        in_specs=[vmem, vmem, vmem, vmem, vmem, vmem],
        out_specs=vmem,
    )(ids_flat, attmask, emb, params["wqkv"], params["wp_t"], params["bp"])
    return out_flat.reshape(B, S, De)


def init_params(key, vocab, word_embedding_dim, embedding_dim):
    k0, k1, k2, k3, k4 = jax.random.split(key, 5)
    Dw, De = word_embedding_dim, embedding_dim
    # Synthetic BERT stand-in params (bf16 weights, f32 accumulation in-kernel).
    token_emb = 0.02 * jax.random.normal(k0, (vocab, Dw), jnp.float32)
    wq = 0.1 * jax.random.normal(k1, (Dw, Dw), jnp.float32)
    wk = 0.1 * jax.random.normal(k2, (Dw, Dw), jnp.float32)
    wv = 0.1 * jax.random.normal(k3, (Dw, Dw), jnp.float32)
    wqkv = jnp.concatenate([wq, wk, wv], axis=1)      # [Dw, 3*Dw] fused projection
    # text_pooler: xavier_normal_ weight [De, Dw] (PyTorch layout), zero bias.
    std = math.sqrt(2.0 / (Dw + De))
    wp = std * jax.random.normal(k4, (De, Dw), jnp.float32)
    bp = jnp.zeros((1, De), jnp.float32)
    return {
        "token_emb": token_emb.astype(jnp.bfloat16),
        "wqkv": wqkv.astype(jnp.bfloat16),
        "wp_t": wp.T.astype(jnp.bfloat16),            # [Dw, De] right-multiply layout
        "bp": bp,
    }


if __name__ == "__main__":
    # args: num_words_title=8, word_embedding_dim=32, embedding_dim=16
    num_words_title = 8
    word_embedding_dim = 32
    embedding_dim = 16
    vocab = 64
    B = 2

    key = jax.random.PRNGKey(0)
    kp, kd, km = jax.random.split(key, 3)
    params = init_params(kp, vocab, word_embedding_dim, embedding_dim)

    # Build `news` = [token ids || attention mask] along dim 1.
    ids = jax.random.randint(kd, (B, num_words_title), 0, vocab, dtype=jnp.int32)
    lengths = jnp.array([num_words_title, num_words_title // 2], dtype=jnp.int32)
    pos = jnp.arange(num_words_title, dtype=jnp.int32)[None, :]
    attmask = (pos < lengths[:, None]).astype(jnp.int32)
    news = jnp.concatenate([ids, attmask], axis=1)    # [B, 2*num_words_title]

    out = text_embedding_forward(news, params, num_words_title)
    out = jax.block_until_ready(out)
    assert out.shape == (B, num_words_title, embedding_dim), out.shape
    assert jnp.all(jnp.isfinite(out))
    print("KERNEL_OK")
</pallas_src>

<mosaic_0001>
module attributes {stable_mosaic.version = 11 : i64} {
  func.func @text_encoder_kernel(%arg0: memref<16x1xi32, #tpu.memory_space<vmem>>, %arg1: memref<2x8xi32, #tpu.memory_space<vmem>>, %arg2: memref<64x32xbf16, #tpu.memory_space<vmem>>, %arg3: memref<32x96xbf16, #tpu.memory_space<vmem>>, %arg4: memref<32x16xbf16, #tpu.memory_space<vmem>>, %arg5: memref<1x16xf32, #tpu.memory_space<vmem>>, %arg6: memref<16x16xf32, #tpu.memory_space<vmem>>) attributes {dimension_semantics = [], scalar_prefetch = 0 : i64, scratch_operands = 0 : i64, tpu.core_type = #tpu.core_type<tc>} {
    %c0 = arith.constant 0 : index
    %c0_0 = arith.constant 0 : index
    %0 = vector.load %arg0[%c0, %c0_0] : memref<16x1xi32, #tpu.memory_space<vmem>>, vector<16x1xi32>
    %1 = tpu.iota {dimensions = array<i32: 1>} : vector<16x64xi32>
    %2 = vector.broadcast %0 : vector<16x1xi32> to vector<16x64xi32>
    %3 = arith.cmpi eq, %2, %1 : vector<16x64xi32>
    %4 = arith.extui %3 : vector<16x64xi1> to vector<16x64xi32>
    %5 = arith.sitofp %4 : vector<16x64xi32> to vector<16x64xf32>
    %6 = arith.truncf %5 : vector<16x64xf32> to vector<16x64xbf16>
    %c0_1 = arith.constant 0 : index
    %c0_2 = arith.constant 0 : index
    %7 = vector.load %arg2[%c0_1, %c0_2] : memref<64x32xbf16, #tpu.memory_space<vmem>>, vector<64x32xbf16>
    %cst = arith.constant dense<0.000000e+00> : vector<16x32xf32>
    %8 = tpu.matmul %6, %7, %cst {dimension_numbers = #tpu.dot_dimension_numbers<[1], [0], [0], [1], [0, 0, 1, 1], [], []>} : vector<16x64xbf16>, vector<64x32xbf16>, vector<16x32xf32> -> vector<16x32xf32>
    %9 = arith.truncf %8 : vector<16x32xf32> to vector<16x32xbf16>
    %c0_3 = arith.constant 0 : index
    %c0_4 = arith.constant 0 : index
    %10 = vector.load %arg3[%c0_3, %c0_4] : memref<32x96xbf16, #tpu.memory_space<vmem>>, vector<32x96xbf16>
    %cst_5 = arith.constant dense<0.000000e+00> : vector<16x96xf32>
    %11 = tpu.matmul %9, %10, %cst_5 {dimension_numbers = #tpu.dot_dimension_numbers<[1], [0], [0], [1], [0, 0, 1, 1], [], []>} : vector<16x32xbf16>, vector<32x96xbf16>, vector<16x96xf32> -> vector<16x96xf32>
    %12 = vector.extract_strided_slice %11 {offsets = [0, 0], sizes = [16, 32], strides = [1, 1]} : vector<16x96xf32> to vector<16x32xf32>
    %13 = vector.shape_cast %12 : vector<16x32xf32> to vector<2x8x32xf32>
    %14 = vector.extract_strided_slice %11 {offsets = [0, 32], sizes = [16, 32], strides = [1, 1]} : vector<16x96xf32> to vector<16x32xf32>
    %15 = vector.shape_cast %14 : vector<16x32xf32> to vector<2x8x32xf32>
    %16 = vector.extract_strided_slice %11 {offsets = [0, 64], sizes = [16, 32], strides = [1, 1]} : vector<16x96xf32> to vector<16x32xf32>
    %17 = vector.shape_cast %16 : vector<16x32xf32> to vector<2x8x32xf32>
    %c0_6 = arith.constant 0 : index
    %c0_7 = arith.constant 0 : index
    %18 = vector.load %arg1[%c0_6, %c0_7] : memref<2x8xi32, #tpu.memory_space<vmem>>, vector<2x8xi32>
    %19 = arith.sitofp %18 : vector<2x8xi32> to vector<2x8xf32>
    %cst_8 = arith.constant 1.000000e+00 : f32
    %20 = vector.broadcast %cst_8 : f32 to vector<2x8xf32>
    %21 = arith.subf %20, %19 : vector<2x8xf32>
    %cst_9 = arith.constant -1.000000e+09 : f32
    %22 = vector.broadcast %cst_9 : f32 to vector<2x8xf32>
    %23 = arith.mulf %21, %22 : vector<2x8xf32>
    %24 = vector.shape_cast %23 : vector<2x8xf32> to vector<2x1x8xf32>
    "tpu.trace_start"() <{level = 10 : i32, message = "bqd,bkd->bqk"}> : () -> ()
    %cst_10 = arith.constant dense<0.000000e+00> : vector<2x8x8xf32>
    %25 = tpu.matmul %13, %15, %cst_10 {dimension_numbers = #tpu.dot_dimension_numbers<[2], [2], [1], [1], [0, 0, 0, 1, 1, 1], [0], [0]>} : vector<2x8x32xf32>, vector<2x8x32xf32>, vector<2x8x8xf32> -> vector<2x8x8xf32>
    "tpu.trace_stop"() : () -> ()
    %cst_11 = arith.constant 0.176776692 : f32
    %26 = vector.broadcast %cst_11 : f32 to vector<2x8x8xf32>
    %27 = arith.mulf %25, %26 : vector<2x8x8xf32>
    %28 = vector.broadcast %24 : vector<2x1x8xf32> to vector<2x8x8xf32>
    %29 = arith.addf %27, %28 : vector<2x8x8xf32>
    %cst_12 = arith.constant dense<0xFF800000> : vector<2x8xf32>
    %30 = vector.multi_reduction <maximumf>, %29, %cst_12 [2] : vector<2x8x8xf32> to vector<2x8xf32>
    %31 = vector.shape_cast %30 : vector<2x8xf32> to vector<2x8x1xf32>
    %32 = vector.broadcast %31 : vector<2x8x1xf32> to vector<2x8x8xf32>
    %33 = arith.subf %29, %32 : vector<2x8x8xf32>
    %34 = math.exp %33 : vector<2x8x8xf32>
    %cst_13 = arith.constant dense<0.000000e+00> : vector<2x8xf32>
    %35 = vector.multi_reduction <add>, %34, %cst_13 [2] : vector<2x8x8xf32> to vector<2x8xf32>
    %36 = vector.shape_cast %35 : vector<2x8xf32> to vector<2x8x1xf32>
    %37 = tpu.reciprocal %36 {approx = true} : vector<2x8x1xf32> -> vector<2x8x1xf32>
    %38 = vector.broadcast %37 : vector<2x8x1xf32> to vector<2x8x8xf32>
    %39 = arith.mulf %34, %38 : vector<2x8x8xf32>
    "tpu.trace_start"() <{level = 10 : i32, message = "bqk,bkd->bqd"}> : () -> ()
    %cst_14 = arith.constant dense<0.000000e+00> : vector<2x8x32xf32>
    %40 = tpu.matmul %39, %17, %cst_14 {dimension_numbers = #tpu.dot_dimension_numbers<[2], [1], [1], [2], [0, 0, 0, 1, 1, 2], [0], [0]>} : vector<2x8x8xf32>, vector<2x8x32xf32>, vector<2x8x32xf32> -> vector<2x8x32xf32>
    "tpu.trace_stop"() : () -> ()
    %41 = vector.shape_cast %8 : vector<16x32xf32> to vector<2x8x32xf32>
    %42 = arith.addf %40, %41 : vector<2x8x32xf32>
    %43 = vector.shape_cast %42 : vector<2x8x32xf32> to vector<16x32xf32>
    %44 = arith.truncf %43 : vector<16x32xf32> to vector<16x32xbf16>
    %c0_15 = arith.constant 0 : index
    %c0_16 = arith.constant 0 : index
    %45 = vector.load %arg4[%c0_15, %c0_16] : memref<32x16xbf16, #tpu.memory_space<vmem>>, vector<32x16xbf16>
    %cst_17 = arith.constant dense<0.000000e+00> : vector<16x16xf32>
    %46 = tpu.matmul %44, %45, %cst_17 {dimension_numbers = #tpu.dot_dimension_numbers<[1], [0], [0], [1], [0, 0, 1, 1], [], []>} : vector<16x32xbf16>, vector<32x16xbf16>, vector<16x16xf32> -> vector<16x16xf32>
    %c0_18 = arith.constant 0 : index
    %c0_19 = arith.constant 0 : index
    %47 = vector.load %arg5[%c0_18, %c0_19] : memref<1x16xf32, #tpu.memory_space<vmem>>, vector<1x16xf32>
    %48 = vector.broadcast %47 : vector<1x16xf32> to vector<16x16xf32>
    %49 = arith.addf %46, %48 : vector<16x16xf32>
    %c0_20 = arith.constant 0 : index
    %c0_21 = arith.constant 0 : index
    %50 = vector.load %arg6[%c0_20, %c0_21] : memref<16x16xf32, #tpu.memory_space<vmem>>, vector<16x16xf32>
    tpu.vector_store %arg6[%c0_20, %c0_21], %49 {strides = array<i32>} : memref<16x16xf32, #tpu.memory_space<vmem>>, vector<16x16xf32>,
    return
  }
}

</mosaic_0001>

<bundles_post_ra>
// kernel: tpu_custom_call.1
= control target key start
LH: loop header
LB: loop body
LE: loop exit
PB: predicated region body
PF: predicated region fallthrough
CT: control target
= control target key end

     0   :  { %v775_v1 = vmov 0   ;;  %v776_v2 = vmov 0.0   ;;  %s915_s0 = inlined_call_operand.vmem [shape: s32[16,1], index: 0, kind: input, shape index: {}]   ;;  %s916_s1 = inlined_call_operand.vmem [shape: s32[2,8], index: 1, kind: input, shape index: {}]   ;;  %s917_s2 = inlined_call_operand.vmem [shape: bf16[64,32], index: 2, kind: input, shape index: {}]   ;;  %s918_s3 = inlined_call_operand.vmem [shape: bf16[32,96], index: 3, kind: input, shape index: {}]   ;;  %s919_s4 = inlined_call_operand.vmem [shape: bf16[32,16], index: 4, kind: input, shape index: {}]   ;;  %s920_s5 = inlined_call_operand.vmem [shape: f32[1,16], index: 5, kind: input, shape index: {}]   ;;  %s921_s6 = inlined_call_operand.hbm [shape: f32[16,16], index: 6, kind: output, shape index: {}]  }
   0x1   :  { %v25_v0 = vld [vmem:[%s915_s0] sm:$0xff]  ;;  %734 = vset.pattern.permute.xlu0 %v775_v1  ;;  %677 = vmatprep.subr.bf16.mxu0 %v776_v2  ;;  %v26_v4 = vld [vmem:[%s915_s0 + $0x8] sm:$0xff]  ;;  %v737_v6 = vld [vmem:[%s917_s2 + $0x10] sm:$0xff]  }
   0x2   :  { %v735_v3 = vld [vmem:[%s917_s2] sm:$0xff]   ;;  %30 = vperm.xlu0 %734, %v25_v0   ;;  %689 = vmatprep.subr.bf16.mxu1 %v776_v2  ;;  %v736_v5 = vld [vmem:[%s917_s2 + $0x8] sm:$0xff]  }
   0x3   :  { %678 = vmatpush3.bf16.msra.mxu0 %v735_v3 }
   0x4   :  { %679 = vmatprep.subr.bf16.mxu0 %v776_v2 }
   0x6   :  { %33 = vperm.xlu0 %734, %v26_v4  }
   0x7   :  { %680 = vmatpush3.bf16.msra.mxu0 %v736_v5 }
   0x8   :  { %11 = vsyncpa [#allocation3], 0  ;;  %681 = vmatprep.subr.bf16.mxu0 %v776_v2  ;;  %vm777_vm0 = vmmov 0   ;;  %v739_v7 = vld [vmem:[%s918_s3] sm:$0xff]   ;;  %v738_v8 = vld [vmem:[%s917_s2 + $0x18] sm:$0xff]   ;;  %v27_v9 = vlaneseq  ;;  %vm74_vm3 = vcmask 523264  }
   0x9   :  { %685 = vmatprep.mubr.msk.bf16.mxu0 %vm777_vm0, %v776_v2  ;;  %693 = vmatprep.mubr.msk.bf16.mxu1 %vm777_vm0, %v776_v2  ;;  %v740_v16 = vld [vmem:[%s918_s3 + $0x8] sm:$0xff]   ;;  %vm136_vm4 = vcmask 261120   ;;  %s778_s3 = smov 96   ;;  %v181_v28 = vld [vmem:[%s916_s1] sm:$0x3]  ;;  %vm376_vm5 = vcmask 64512  }
   0xa   :  { %690 = vmatpush3.bf16.msra.mxu1 %v739_v7  ;;  %v28_v10 = vand.u32 127, %v27_v9  ;;  %v779_v29 = vmov 1966171168   ;;  %v182_v31 = vcvt.s32.f32 %v181_v28  ;;  %v190_v33 = vshrl.u32 %v27_v9, 7  ;;  %s780_s1 = smov 64   ;;  %v741_v9 = vld [vmem:[%s919_s4] sm:$0xff]  }
   0xb   :  { %682 = vmatpush3.bf16.msra.mxu0 %v737_v6  ;;  %691 = vmatprep.subr.bf16.mxu1 %v776_v2  ;;  %v187_v30 = vunpack.c.l.s4 %v779_v29  ;;  %vm619_vm6 = vcmask 130048   ;;  %s781_s19 = smov [#allocation2]  }
   0xc   :  { %683 = vmatprep.subr.bf16.mxu0 %v776_v2  ;;  %v183_v34 = vsub.f32 1.0, %v182_v31  ;;  %v366_v39 = vsub.s32 0, %v190_v33 }
   0xd   :  { %v188_v32 = vunpack.c.0.s8 %v187_v30 }
   0xe   :  { %692 = vmatpush3.bf16.msra.mxu1 %v740_v16  ;;  %v184_v36 = vmul.f32 -1e+09, %v183_v34 }
   0xf   :  { %684 = vmatpush3.bf16.msra.mxu0 %v738_v8  ;;  %697 = vmatprep.subr.mxu1 %v776_v2  ;;  %v191_v35 = vsub.s32 %v188_v32, %v190_v33 }
  0x10   :  { %717 = vmatprep.subr.bf16.mxu0 %v776_v2 }
  0x11   :  { %v192_v37 = vrot.slane %v184_v36, %v191_v35 }
  0x13   :  { %v200_v38 = vrot.slane %v192_v37, %v191_v35  ;;  %v193_v40 = vcombine.high %v192_v37, %v192_v37 }
  0x15   :  { %v367_v41 = vrot.slane %v200_v38, %v366_v39  ;;  %v207_v42 = vrot.slane %v193_v40, %v191_v35 }
  0x17   :  { %v371_v47 = vrot.slane %v207_v42, %v366_v39 }
  0x81   :  { %v31_v11 = vpop.permute.xlu0 %30 }
  0x82   :  { %vm35_vm1 = vcmp.eq.s32.totalorder %v31_v11, %v28_v10 }
  0x83   :  { %v638_v13 = vsel %vm35_vm1, 1.0, %v776_v2 }
  0x85   :  { %v34_v12 = vpop.permute.xlu0 %33 }
  0x86   :  { %vm36_vm2 = vcmp.eq.s32.totalorder %v34_v12, %v28_v10  ;;  %v742_v10 = vld [vmem:[%s919_s4 + $0x8] sm:$0xff]   ;;  %s627_s4 = sshll.u32 %s781_s19, 4  ;;  %s628_s4 = int_to_ptr.vmem [resolvable:$true] %s627_s4 }
  0x87   :  { %v639_v14 = vsel %vm36_vm2, 1.0, %v776_v2  ;;  %s751_s20 = scalar_lea.vmem %s628_s4, 256  ;;  %p756_p1 = scmp.lt.s32.totalorder %s628_s4, %s628_s4 }
  0x88   :  { %v41_v15 = vpack.c.bf16 %v639_v14, %v638_v13  ;;  %p752_p0 = scmp.ne.s32.totalorder %s628_s4, %s751_s20  ;;  %p757_p2 = scmp.lt.s32.totalorder %s751_s20, %s751_s20 }
  0x8a   :  { %686 = vmatmul.mubr.msk.bf16.vlgmr.msra.gmra.mrb[0].mxu0 %vm74_vm3, %v41_v15  ;;  %p758_p3 = por %p757_p2, %p756_p1 }
  0x8b   :  { %721 = vmatprep.mubr.msk.bf16.mxu0 %vm777_vm0, %v776_v2  ;;  %718 = vmatpush3.bf16.msra.mxu0 %v741_v9 }
  0x8c   :  { %719 = vmatprep.subr.bf16.mxu0 %v776_v2  ;;  %p759_p4 = pnand %p758_p3, %p752_p0 }
  0x8f   :  { %720 = vmatpush3.bf16.msra.mxu0 %v742_v10 }
 0x15d   :  { %v859_v17 = vpop.f32.mrb[0].mxu0 }
 0x15e   :  { %v687_v18 = vpop.f32.mrb[1].mxu0 }
 0x15f   :  { %v861_v19 = vpop.f32.mrb[2].mxu0 }
 0x160   :  { %v119_v20 = vpack.c.bf16 %v861_v19, %v859_v17  ;;  %v688_v21 = vpop.f32.mrb[3].mxu0 }
 0x162   :  { %694 = vmatmul.mubr.msk.bf16.vlgmr.msra.gmra.mrb[0].mxu1 %vm136_vm4, %v119_v20 }
 0x163   :  { %699 = vmatprep.mubr.msk.f32.mxu1 %vm777_vm0, %v776_v2 }
 0x235   :  { %v174_v22 = vpop.f32.mrb[0].mxu1 }
 0x236   :  { %209 = vrot.lane.b32.xlu1 %v174_v22, %s778_s3  ;;  %v695_v23 = vpop.f32.mrb[1].mxu1 }
 0x237   :  { %v177_v24 = vpop.f32.mrb[2].mxu1 }
 0x238   :  { %v696_v25 = vpop.f32.mrb[3].mxu1 }
 0x23a   :  { %286 = vrot.lane.b32.xlu1 %v177_v24, %s778_s3 }
 0x2a8   :  { %v210_v26 = vpop.permute.xlu1 %209 }
 0x2a9   :  { %698 = vmatpush3.xpose.msk.msra.mxu1 %vm136_vm4, %v210_v26 }
 0x2aa   :  { %702 = vmatprep.subr.mxu1 %v776_v2 }
 0x2ac   :  { %700 = vmatmul.mubr.msk.f32.vlgmr.msra.gmra.mrb[4].mxu1 %vm136_vm4, %v174_v22  ;;  %v287_v27 = vpop.permute.xlu1 %286 }
 0x2ad   :  { %703 = vmatpush3.xpose.msk.msra.mxu1 %vm136_vm4, %v287_v27  ;;  %704 = vmatprep.mubr.msk.f32.mxu1 %vm777_vm0, %v776_v2 }
 0x2ae   :  { %707 = vmatprep.subr.mxu1 %v776_v2 }
 0x2b0   :  { %705 = vmatmul.mubr.msk.f32.vlgmr.msra.gmra.mrb[6].mxu1 %vm136_vm4, %v177_v24 }
 0x2b1   :  { %709 = vmatprep.mubr.msk.f32.mxu1 %vm777_vm0, %v776_v2 }
 0x37f   :  { %v281_v43 = vpop.f32.mrb[4].mxu1 }
 0x380   :  { %v362_v44 = vmul.f32 0.17677669, %v281_v43  ;;  %v701_v45 = vpop.f32.mrb[5].mxu1 }
 0x382   :  { %v374_v46 = vadd.f32 %v367_v41, %v362_v44 }
 0x383   :  { %v358_v48 = vpop.f32.mrb[6].mxu1 }
 0x384   :  { %v363_v49 = vmul.f32 0.17677669, %v358_v48  ;;  %v706_v50 = vpop.f32.mrb[7].mxu1  ;;  %v377_v51 = vsel %vm376_vm5, %v374_v46, -inf }
 0x385   :  { %378 = vmax.xlane.f32.xlu0 %v377_v51 }
 0x386   :  { %v375_v52 = vadd.f32 %v371_v47, %v363_v49 }
 0x388   :  { %v380_v53 = vsel %vm376_vm5, %v375_v52, -inf }
 0x389   :  { %381 = vmax.xlane.f32.xlu1 %v380_v53 }
 0x39a   :  { %399 = vrot.lane.b32.xlu1 %v174_v22, %s780_s1 }
 0x412   :  { %v379_v54 = vpop.xlane.xlu0 %378 }
 0x413   :  { %v383_v55 = vsub.f32 %v374_v46, %v379_v54 }
 0x415   :  { %v385_v56 = vmul.f32 1.442695, %v383_v55 }
 0x416   :  { %v382_v57 = vpop.xlane.xlu1 %381 }
 0x417   :  { %743 = vpow2.f32 %v385_v56  ;;  %v384_v58 = vsub.f32 %v375_v52, %v382_v57 }
 0x419   :  { %v387_v59 = vmul.f32 1.442695, %v384_v58 }
 0x41a   :  { %v400_v60 = vpop.permute.xlu1 %399 }
 0x41b   :  { %745 = vpow2.f32 %v387_v59  ;;  %708 = vmatpush3.msra.mxu1 %v400_v60 }
 0x41c   :  { %712 = vmatprep.subr.mxu1 %v776_v2 }
 0x421   :  { %v744_v61 = vpop.eup %743 }
 0x422   :  { %v389_v62 = vsel %vm376_vm5, %v744_v61, 0.0 }
 0x423   :  { %390 = vadd.xlane.f32.xlu0 %v389_v62 }
 0x425   :  { %v746_v63 = vpop.eup %745 }
 0x426   :  { %v392_v0 = vsel %vm376_vm5, %v746_v63, 0.0 }
 0x427   :  { %393 = vadd.xlane.f32.xlu0 %v392_v0 }
 0x43d   :  { %475 = vrot.lane.b32.xlu0 %v177_v24, %s780_s1 }
 0x4b0   :  { %v391_v1 = vpop.xlane.xlu0 %390 }
 0x4b1   :  { %747 = vrcp.f32 %v391_v1 }
 0x4b4   :  { %v394_v3 = vpop.xlane.xlu0 %393 }
 0x4b5   :  { %749 = vrcp.f32 %v394_v3 }
 0x4b8   :  { %v476_v6 = vpop.permute.xlu0 %475 }
 0x4bb   :  { %v748_v4 = vpop.eup %747 }
 0x4bc   :  { %v397_v5 = vmul.f32 %v748_v4, %v744_v61 }
 0x4be   :  { %710 = vmatmul.mubr.msk.f32.vlgmr.msra.gmra.mrb[8].mxu1 %vm376_vm5, %v397_v5 }
 0x4bf   :  { %v750_v7 = vpop.eup %749  ;;  %713 = vmatpush3.msra.mxu1 %v476_v6  ;;  %714 = vmatprep.mubr.msk.f32.mxu1 %vm777_vm0, %v776_v2  ;;  %v654_v2 = vld [vmem:[%s920_s5] ss:$0 sm:$0xff] }
 0x4c0   :  { %v398_v8 = vmul.f32 %v750_v7, %v746_v63 }
 0x4c2   :  { %715 = vmatmul.mubr.msk.f32.vlgmr.msra.gmra.mrb[10].mxu1 %vm376_vm5, %v398_v8 }
 0x591   :  { %v471_v11 = vpop.f32.mrb[8].mxu1 }
 0x592   :  { %v472_v12 = vadd.f32 %v471_v11, %v859_v17  ;;  %v711_v13 = vpop.f32.mrb[9].mxu1 }
 0x595   :  { %v547_v14 = vpop.f32.mrb[10].mxu1 }
 0x596   :  { %v548_v15 = vadd.f32 %v547_v14, %v861_v19  ;;  %v716_v16 = vpop.f32.mrb[11].mxu1 }
 0x598   :  { %v551_v18 = vpack.c.bf16 %v548_v15, %v472_v12 }
 0x59a   :  { %722 = vmatmul.mubr.msk.bf16.vlgmr.msra.gmra.mrb[4].mxu0 %vm136_vm4, %v551_v18 }
 0x66d   :  { %v612_v20 = vpop.f32.mrb[4].mxu0 }
 0x66e   :  { %v613_v21 = vadd.f32 %v654_v2, %v612_v20  ;;  %v723_v22 = vpop.f32.mrb[5].mxu0 }
 0x66f   :  { %v615_v23 = vpop.f32.mrb[6].mxu0 }
 0x670   :  { %620 = vst.msk [vmem:[#allocation2] sm:$0xff] %vm619_vm6, %v613_v21  ;;  %v616_v17 = vadd.f32 %v654_v2, %v615_v23  ;;  %v724_v24 = vpop.f32.mrb[7].mxu0 }
 0x672   :  { %621 = vst.msk [vmem:[#allocation2 + $0x8] sm:$0xff] %vm619_vm6, %v616_v17 }
 0x673   :  { %762 = shalt.err (!%p759_p4)
}
 0x674   :  { %s763_s22 = scalar_lea.hbm %s921_s6, 256 }
 0x675   :  { %p764_p5 = scmp.ne.s32.totalorder %s921_s6, %s763_s22  ;;  %p767_p6 = scmp.lt.u32.totalorder %s763_s22, %s921_s6 }
 0x677   :  { %p769_p7 = pnand %p767_p6, %p764_p5 }
 0x679   :  { %772 = shalt.err (!%p769_p7)
}
 0x67a   :  { %s782_s27 = smov 128   ;;  %s783_s28 = smov 8  }
 0x67b   :  { %633 = dma.vmem_to_hbm [thread:$0]  %s628_s4, 256, %s921_s6, [#allocation3], %s782_s27, %s782_s27, %s783_s28  }
 0x67c   :  { %773 = dma.done.wait [#allocation3], 256  }
 0x67d   :  { %774 = vsyncadd [#allocation3], 4294967040 }
 0x67e   :  { %637 = vsyncpa [#allocation3], 1 }

</bundles_post_ra>
